<compile_context>
chip_gen: v6e
topology: v6e:2x2x1
jax: 0.10.0
libtpu: 0.0.40
codegen_flags: <defaults>
</compile_context>

<pallas_src>
import jax
import jax.numpy as jnp
from jax.experimental import pallas as pl
from jax.experimental.pallas import tpu as pltpu


def _se_kernel(x_ref, w1_ref, b1_ref, w2_ref, b2_ref, o_ref):
    # Squeeze: global average pool over L, accumulated in f32
    # (single XLU cross-lane reduction + constant multiply).
    inv_l = 1.0 / x_ref.shape[-1]                                   # compile-time const
    pooled = jnp.sum(x_ref[...].astype(jnp.float32), axis=-1) * inv_l   # (Bt, C)

    # Excite: two 1x1 convs on the VPU (Cb is tiny; no MXU, no transposes).
    w1 = w1_ref[...].astype(jnp.float32)                            # (Cb, C)
    b1 = b1_ref[...].astype(jnp.float32)                            # (1, Cb)
    w2 = w2_ref[...].astype(jnp.float32)                            # (C, Cb)
    b2 = b2_ref[...].astype(jnp.float32)                            # (1, C)

    # y1[b, j] = relu(sum_c pooled[b, c] * w1[j, c] + b1[j])
    y1 = jnp.sum(pooled[:, None, :] * w1[None, :, :], axis=-1) + b1     # (Bt, Cb)
    y1 = jnp.maximum(y1, 0.0)

    # y2[b, i] = sigmoid(sum_j y1[b, j] * w2[i, j] + b2[i])
    y2 = jnp.sum(y1[:, None, :] * w2[None, :, :], axis=-1) + b2         # (Bt, C)
    scale = jax.nn.sigmoid(y2)                                           # (Bt, C)

    # Scale: re-read x from the resident VMEM block (vld is nearly free) rather
    # than keeping a multi-MiB live value across the excite path. Lane-dense
    # store (last dim = L, multiple of 128).
    o_ref[...] = (x_ref[...] * scale[:, :, None].astype(x_ref.dtype)).astype(o_ref.dtype)


def se_layer_1d(x, w1, b1, w2, b2):
    """x: (B, C, L). w1: (Cb, C), b1: (Cb,), w2: (C, Cb), b2: (C,)."""
    B, C, L = x.shape
    Cb = w1.shape[0]

    # Biases pre-shaped in the wrapper (zero-cost plumbing; no in-kernel reshapes).
    b1_2d = b1.reshape(1, Cb)
    b2_2d = b2.reshape(1, C)

    # --- Batch tile selection (mem-bound streaming kernel) ------------------
    per_batch_bytes = C * L * x.dtype.itemsize
    target_bytes = 5 * 1024 * 1024                 # ~4-6 MiB blocks: HBM roofline knee
    bt = max(1, min(B, target_bytes // max(per_batch_bytes, 1)))
    # Keep the grid at >= ~4 steps so input DMA / compute / output writeback
    # overlap, and the "parallel" batch axis shards across both v7x TCs.
    bt = min(bt, max(1, B // 4))
    # cdiv grid: no divisor search (never degrade to bt=1 for prime B); Pallas
    # masks the out-of-bounds rows of the last partial block on write.
    grid = (pl.cdiv(B, bt),)

    # --- VMEM budget ---------------------------------------------------------
    # x + out blocks are double-buffered (4 * block) plus the tiny weights/biases.
    block_bytes = bt * per_batch_bytes
    weight_bytes = (w1.size + w2.size + Cb + C) * 4
    vmem_needed = 4 * block_bytes + 4 * weight_bytes + (1 << 20)

    # Generation-aware cap: v7x has 64 MiB physical VMEM per TC, v5e/v6e 128 MiB.
    try:
        vmem_cap = pltpu.get_tpu_info().vmem_capacity_bytes
    except Exception:
        vmem_cap = 64 * 1024 * 1024                # conservative (v7x) fallback
    gen_cap = (40 << 20) if vmem_cap <= (64 << 20) else (64 << 20)
    vmem_limit = int(min(gen_cap, max(4 << 20, vmem_needed)))

    return pl.pallas_call(
        _se_kernel,
        out_shape=jax.ShapeDtypeStruct((B, C, L), x.dtype),
        grid_spec=pltpu.PrefetchScalarGridSpec(
            num_scalar_prefetch=0,
            grid=grid,
            in_specs=[
                pl.BlockSpec((bt, C, L), lambda b: (b, 0, 0)),   # x
                pl.BlockSpec((Cb, C), lambda b: (0, 0)),         # w1
                pl.BlockSpec((1, Cb), lambda b: (0, 0)),         # b1 (row)
                pl.BlockSpec((C, Cb), lambda b: (0, 0)),         # w2
                pl.BlockSpec((1, C), lambda b: (0, 0)),          # b2 (row)
            ],
            out_specs=pl.BlockSpec((bt, C, L), lambda b: (b, 0, 0)),
        ),
        compiler_params=pltpu.CompilerParams(
            dimension_semantics=("parallel",),
            vmem_limit_bytes=vmem_limit),
    )(x, w1, b1_2d, w2, b2_2d)


def se_layer_1d_ref(x, w1, b1, w2, b2):
    pooled = jnp.mean(x, axis=-1, keepdims=True)                      # (B, C, 1)
    y1 = jnp.einsum("oc,bci->boi", w1, pooled) + b1[None, :, None]    # (B, Cb, 1)
    y1 = jnp.maximum(y1, 0.0)
    y2 = jnp.einsum("oc,bci->boi", w2, y1) + b2[None, :, None]        # (B, C, 1)
    return x * jax.nn.sigmoid(y2)


def _make_params(key, C, Cb):
    k1, k2, k3, k4 = jax.random.split(key, 4)
    w1 = jax.random.normal(k1, (Cb, C), dtype=jnp.float32) * (1.0 / jnp.sqrt(C))
    b1 = jax.random.normal(k2, (Cb,), dtype=jnp.float32) * 0.1
    w2 = jax.random.normal(k3, (C, Cb), dtype=jnp.float32) * (1.0 / jnp.sqrt(Cb))
    b2 = jax.random.normal(k4, (C,), dtype=jnp.float32) * 0.1
    return w1, b1, w2, b2


if __name__ == "__main__":
    # Module config: channel=32, reduction=16 -> bottleneck=2 (matches __init__).
    C, L = 32, 128
    reduction = 16
    Cb = int(C / reduction)

    key = jax.random.PRNGKey(0)
    kp, kx1, kx2 = jax.random.split(key, 3)
    w1, b1, w2, b2 = _make_params(kp, C, Cb)

    # Primary small test (B=2).
    x = jax.random.normal(kx1, (2, C, L), dtype=jnp.float32)
    out = jax.block_until_ready(se_layer_1d(x, w1, b1, w2, b2))
    ref = jax.block_until_ready(se_layer_1d_ref(x, w1, b1, w2, b2))
    assert out.shape == x.shape
    assert jnp.allclose(out, ref, atol=1e-5, rtol=1e-5), "mismatch vs reference (B=2)"

    # Secondary test exercising the cdiv grid with a partial last block (B=37,
    # bt=9 -> 5 grid steps, last block has 1 valid row).
    x2 = jax.random.normal(kx2, (37, C, L), dtype=jnp.float32)
    out2 = jax.block_until_ready(se_layer_1d(x2, w1, b1, w2, b2))
    ref2 = jax.block_until_ready(se_layer_1d_ref(x2, w1, b1, w2, b2))
    assert out2.shape == x2.shape
    assert jnp.allclose(out2, ref2, atol=1e-5, rtol=1e-5), "mismatch vs reference (B=37)"

    print("KERNEL_OK")
</pallas_src>

<mosaic_0001>
module attributes {stable_mosaic.version = 11 : i64} {
  func.func @_se_kernel(%arg0: i32, %arg1: memref<1x32x128xf32, #tpu.memory_space<vmem>>, %arg2: memref<2x32xf32, #tpu.memory_space<vmem>>, %arg3: memref<1x2xf32, #tpu.memory_space<vmem>>, %arg4: memref<32x2xf32, #tpu.memory_space<vmem>>, %arg5: memref<1x32xf32, #tpu.memory_space<vmem>>, %arg6: memref<1x32x128xf32, #tpu.memory_space<vmem>>) attributes {dimension_semantics = [#tpu.dimension_semantics<parallel>], iteration_bounds = array<i64: 2>, scalar_prefetch = 0 : i64, scratch_operands = 0 : i64, tpu.core_type = #tpu.core_type<tc>, window_params = [{transform_indices = @transform_0, window_bounds = array<i64: 1, 32, 128>}, {pipeline_mode = #tpu.pipeline_mode<synchronous>, transform_indices = @transform_1, window_bounds = array<i64: 2, 32>}, {pipeline_mode = #tpu.pipeline_mode<synchronous>, transform_indices = @transform_2, window_bounds = array<i64: 1, 2>}, {pipeline_mode = #tpu.pipeline_mode<synchronous>, transform_indices = @transform_3, window_bounds = array<i64: 32, 2>}, {pipeline_mode = #tpu.pipeline_mode<synchronous>, transform_indices = @transform_4, window_bounds = array<i64: 1, 32>}, {transform_indices = @transform_5, window_bounds = array<i64: 1, 32, 128>}]} {
    %c0 = arith.constant 0 : index
    %c0_0 = arith.constant 0 : index
    %c0_1 = arith.constant 0 : index
    %0 = vector.load %arg1[%c0, %c0_0, %c0_1] : memref<1x32x128xf32, #tpu.memory_space<vmem>>, vector<1x32x128xf32>
    %cst = arith.constant dense<0.000000e+00> : vector<1x32xf32>
    %1 = vector.multi_reduction <add>, %0, %cst [2] : vector<1x32x128xf32> to vector<1x32xf32>
    %cst_2 = arith.constant 7.812500e-03 : f32
    %2 = vector.broadcast %cst_2 : f32 to vector<1x32xf32>
    %3 = arith.mulf %1, %2 : vector<1x32xf32>
    %c0_3 = arith.constant 0 : index
    %c0_4 = arith.constant 0 : index
    %4 = vector.load %arg2[%c0_3, %c0_4] : memref<2x32xf32, #tpu.memory_space<vmem>>, vector<2x32xf32>
    %c0_5 = arith.constant 0 : index
    %c0_6 = arith.constant 0 : index
    %5 = vector.load %arg3[%c0_5, %c0_6] : memref<1x2xf32, #tpu.memory_space<vmem>>, vector<1x2xf32>
    %c0_7 = arith.constant 0 : index
    %c0_8 = arith.constant 0 : index
    %6 = vector.load %arg4[%c0_7, %c0_8] : memref<32x2xf32, #tpu.memory_space<vmem>>, vector<32x2xf32>
    %c0_9 = arith.constant 0 : index
    %c0_10 = arith.constant 0 : index
    %7 = vector.load %arg5[%c0_9, %c0_10] : memref<1x32xf32, #tpu.memory_space<vmem>>, vector<1x32xf32>
    %8 = vector.shape_cast %3 : vector<1x32xf32> to vector<1x1x32xf32>
    %9 = vector.shape_cast %4 : vector<2x32xf32> to vector<1x2x32xf32>
    %10 = vector.broadcast %8 : vector<1x1x32xf32> to vector<1x2x32xf32>
    %11 = arith.mulf %10, %9 : vector<1x2x32xf32>
    %cst_11 = arith.constant dense<0.000000e+00> : vector<1x2xf32>
    %12 = vector.multi_reduction <add>, %11, %cst_11 [2] : vector<1x2x32xf32> to vector<1x2xf32>
    %13 = arith.addf %12, %5 : vector<1x2xf32>
    %cst_12 = arith.constant 0.000000e+00 : f32
    %14 = vector.broadcast %cst_12 : f32 to vector<1x2xf32>
    %15 = arith.maximumf %13, %14 : vector<1x2xf32>
    %16 = vector.shape_cast %15 : vector<1x2xf32> to vector<1x1x2xf32>
    %17 = vector.shape_cast %6 : vector<32x2xf32> to vector<1x32x2xf32>
    %18 = vector.broadcast %16 : vector<1x1x2xf32> to vector<1x32x2xf32>
    %19 = arith.mulf %18, %17 : vector<1x32x2xf32>
    %cst_13 = arith.constant dense<0.000000e+00> : vector<1x32xf32>
    %20 = vector.multi_reduction <add>, %19, %cst_13 [2] : vector<1x32x2xf32> to vector<1x32xf32>
    %21 = arith.addf %20, %7 : vector<1x32xf32>
    %22 = arith.negf %21 : vector<1x32xf32>
    %23 = math.exp %22 : vector<1x32xf32>
    %cst_14 = arith.constant 1.000000e+00 : f32
    %24 = vector.broadcast %cst_14 : f32 to vector<1x32xf32>
    %25 = arith.addf %24, %23 : vector<1x32xf32>
    %26 = arith.divf %24, %25 : vector<1x32xf32>
    %c0_15 = arith.constant 0 : index
    %c0_16 = arith.constant 0 : index
    %c0_17 = arith.constant 0 : index
    %27 = vector.load %arg1[%c0_15, %c0_16, %c0_17] : memref<1x32x128xf32, #tpu.memory_space<vmem>>, vector<1x32x128xf32>
    %28 = vector.shape_cast %26 : vector<1x32xf32> to vector<1x32x1xf32>
    %29 = vector.broadcast %28 : vector<1x32x1xf32> to vector<1x32x128xf32>
    %30 = arith.mulf %27, %29 : vector<1x32x128xf32>
    %c0_18 = arith.constant 0 : index
    %c0_19 = arith.constant 0 : index
    %c0_20 = arith.constant 0 : index
    %31 = vector.load %arg6[%c0_18, %c0_19, %c0_20] : memref<1x32x128xf32, #tpu.memory_space<vmem>>, vector<1x32x128xf32>
    tpu.vector_store %arg6[%c0_18, %c0_19, %c0_20], %30 {strides = array<i32>} : memref<1x32x128xf32, #tpu.memory_space<vmem>>, vector<1x32x128xf32>,
    return
  }
  func.func @transform_0(%arg0: i32) -> (i32, i32, i32) {
    %c0_i32 = arith.constant 0 : i32
    %c0_i32_0 = arith.constant 0 : i32
    %c0_i32_1 = arith.constant 0 : i32
    return %arg0, %c0_i32, %c0_i32_0 : i32, i32, i32
  }
  func.func @transform_1(%arg0: i32) -> (i32, i32) {
    %c0_i32 = arith.constant 0 : i32
    %c0_i32_0 = arith.constant 0 : i32
    %c0_i32_1 = arith.constant 0 : i32
    return %c0_i32, %c0_i32_0 : i32, i32
  }
  func.func @transform_2(%arg0: i32) -> (i32, i32) {
    %c0_i32 = arith.constant 0 : i32
    %c0_i32_0 = arith.constant 0 : i32
    %c0_i32_1 = arith.constant 0 : i32
    return %c0_i32, %c0_i32_0 : i32, i32
  }
  func.func @transform_3(%arg0: i32) -> (i32, i32) {
    %c0_i32 = arith.constant 0 : i32
    %c0_i32_0 = arith.constant 0 : i32
    %c0_i32_1 = arith.constant 0 : i32
    return %c0_i32, %c0_i32_0 : i32, i32
  }
  func.func @transform_4(%arg0: i32) -> (i32, i32) {
    %c0_i32 = arith.constant 0 : i32
    %c0_i32_0 = arith.constant 0 : i32
    %c0_i32_1 = arith.constant 0 : i32
    return %c0_i32, %c0_i32_0 : i32, i32
  }
  func.func @transform_5(%arg0: i32) -> (i32, i32, i32) {
    %c0_i32 = arith.constant 0 : i32
    %c0_i32_0 = arith.constant 0 : i32
    %c0_i32_1 = arith.constant 0 : i32
    return %arg0, %c0_i32, %c0_i32_0 : i32, i32, i32
  }
}

</mosaic_0001>

<bundles_post_ra>
// kernel: tpu_custom_call.1
= control target key start
LH: loop header
LB: loop body
LE: loop exit
PB: predicated region body
PF: predicated region fallthrough
CT: control target
= control target key end

     0   :  { %10 = vsyncpa [#allocation3], 0  ;;  %s1775_s0 = inlined_call_operand.hbm [shape: f32[2,32,128], index: 0, kind: input, shape index: {}]   ;;  %s1776_s1 = inlined_call_operand.vmem [shape: f32[2,32], index: 1, kind: input, shape index: {}]   ;;  %s1777_s2 = inlined_call_operand.vmem [shape: f32[1,2], index: 2, kind: input, shape index: {}]   ;;  %s1778_s3 = inlined_call_operand.vmem [shape: f32[32,2], index: 3, kind: input, shape index: {}]   ;;  %s1779_s4 = inlined_call_operand.vmem [shape: f32[1,32], index: 4, kind: input, shape index: {}]   ;;  %s1780_s5 = inlined_call_operand.hbm [shape: f32[2,32,128], index: 5, kind: output, shape index: {}]  }
   0x1   :  { %12 = vsyncpa [#allocation3 + $0x1], 0 }
   0x2   :  { %13 = vsyncpa [#allocation4], 0 }
   0x3   :  { %15 = vsyncpa [#allocation4 + $0x1], 0  ;;  %s1405_s18 = smov 0   ;;  %s1407_s19 = smov 0  }
   0x4   :  { %s1409_s20 = smov 0   ;;  %s1411_s21 = smov 0  }
   0x5 LB: > { %s1426_s22 = sadd.s32 4294967295, %s1366_s21   ;;  %s1183_s23 = sadd.s32 4294967294, %s1366_s21   ;;  %s1366_s21 = sphi %s1411_s21, %s1795_s21   ;;  %s1362_s20 = sphi %s1409_s20, %s1794_s20   ;;  %s1358_s19 = sphi %s1407_s19, %s1793_s19   ;;  %s1354_s18 = sphi %s1405_s18, %s1792_s18  }
   0x6   : > { %s1430_s24 = sadd.s32 1, %s1366_s21   ;;  %s28_s25 = sadd.s32 1, %s1362_s20 }
   0x7   : > { %s25_s26 = ssub.s32 %s1366_s21, %s1430_s24  ;;  %p35_p0 = scmp.ne.s32.totalorder %s1362_s20, %s1358_s19 }
   0x8   : > { %p26_p1 = scmp.eq.s32.totalorder %s25_s26, 0  ;;  %p36_p2 = scmp.eq.s32.totalorder %s1366_s21, 0 }
   0x9   : > { %p41_p3 = scmp.ne.s32.totalorder %s1358_s19, %s1354_s18  ;;  %p42_p4 = scmp.eq.s32.totalorder %s1426_s22, 0 }
   0xa   : > { %s1442_s27 = scalar_select %p26_p1, %s1362_s20, %s28_s25  }
   0xb   : > { %p1444_p5 = por %p36_p2, %p35_p0  ;;  %p1448_p6 = por %p42_p4, %p41_p3 }
   0xc   : > { %p149_p7 = scmp.eq.s32.totalorder %s1426_s22, 1  ;;  %p155_p8 = scmp.eq.s32.totalorder %s1183_s23, 1 }
   0xd   : > { %s1784_s29 = scalar_select %p1448_p6, 1, 0 }
   0xe   : > { %p1217_p10 = scmp.lt.s32.totalorder %s1366_s21, 2  ;;  %p1455_p11 = por %p149_p7, %p35_p0 }
   0xf   : > { %p1459_p12 = por %p155_p8, %p41_p3  ;;  %s187_s7 = sand.u32 1, %s1362_s20  }
  0x10   : > { %s1785_s30 = scalar_select %p1455_p11, 1, 0 }
  0x11   : > { %s1786_s6 = scalar_select %p1459_p12, 1, 0 }
  0x12   : > { %s1203_s8 = sshll.u32 %s1366_s21, 9  ;;  %s1186_s9 = sshll.u32 %s187_s7, 5 }
  0x13   : > { %s1468_s12 = scalar_lea.hbm %s1775_s0, %s1203_s8  ;;  %s191_s13 = scalar_lea.vmem [#allocation2], %s1186_s9 }
  0x14   : > { %s198_s14 = sshll.u32 %s191_s13, 4  ;;  %p1472_p13 = pnand %p1217_p10, %p1444_p5  ;;  %s1476_s14 = int_to_ptr.vmem [resolvable:$true] %s198_s14 }
  0x15   : > { %s1478_s16 = scalar_lea.sflag [#allocation3], %s187_s7  ;;  %s1274_s17 = scalar_lea.hbm %s1468_s12, 512 }
  0x16   : > { %p1275_p0 = scmp.ne.s32.totalorder %s1468_s12, %s1274_s17  ;;  %p1276_p1 = pneg %p1472_p13 }
  0x17   : > { %s1279_s26 = scalar_lea.hbm %s1775_s0, 1024  ;;  %p1280_p4 = scmp.lt.s32.totalorder %s1468_s12, %s1775_s0 }
  0x18   : > { %p1277_p2 = pnand %p1276_p1, %p1275_p0  ;;  %p1281_p5 = scmp.lt.s32.totalorder %s1279_s26, %s1274_s17 }
  0x1a   : > { %p1278_p3 = pneg %p1277_p2  ;;  %p1282_p7 = por %p1281_p5, %p1280_p4 }
  0x1c   : > { %p1283_p8 = pnand %p1282_p7, %p1278_p3 }
  0x1e   : > { %1286 = shalt.err (!%p1283_p8)
}
  0x1f   : > { %s1287_s7 = scalar_lea.vmem %s1476_s14, 512  ;;  %s1368_s9 = smov [#allocation2]  }
  0x20   : > { %p1288_p10 = scmp.ne.s32.totalorder %s1476_s14, %s1287_s7  ;;  %s1292_s10 = sshll.u32 %s1368_s9, 4  ;;  %s1293_s10 = int_to_ptr.vmem [resolvable:$false] %s1292_s10 }
  0x21   : > { %s1294_s11 = scalar_lea.vmem %s1293_s10, 1024  ;;  %p1295_p2 = scmp.lt.s32.totalorder %s1476_s14, %s1293_s10 }
  0x22   : > { %p1290_p9 = pnand %p1288_p10, %p1276_p1  ;;  %p1296_p12 = scmp.lt.s32.totalorder %s1294_s11, %s1287_s7 }
  0x24   : > { %p1291_p0 = pneg %p1290_p9  ;;  %p1297_p11 = por %p1296_p12, %p1295_p2 }
  0x26   : > { %p1298_p6 = pnand %p1297_p11, %p1291_p0 }
  0x28   : > { %1301 = shalt.err (!%p1298_p6)
}
  0x29   : > { %s1369_s13 = smov 128   ;;  %s1370_s17 = smov 8  }
  0x2a   : > { %1212 = dma.hbm_to_vmem [thread:$0]  (!%p1472_p13), %s1468_s12, 512, %s1476_s14, %s1478_s16, %s1369_s13, %s1369_s13, %s1370_s17  }
  0x2b   : > { %p1189_p9 = scmp.ge.s32.totalorder %s1366_s21, 1  ;;  %p206_p1 = scmp.lt.s32.totalorder %s1366_s21, 3 }
  0x2d   : > { %p207_p3 = pnand %p1189_p9, %p206_p1 }
  0x2e   : > { %s1502_s23 = sand.u32 (!%p207_p3), 1, %s1358_s19   ;;  %p1788_p6 = scmp.ne.s32.totalorder (!%p207_p3), %s1784_s29, 0 }
  0x2f   : > { %210 = sbr.rel (%p207_p3) target bundleno = 996 (0x3e4), region = 40  ;;  %s1190_s25 = sshll.u32 (!%p207_p3), %s1502_s23, 5 }
  0x30   : > { %s213_s26 = scalar_lea.sflag (!%p207_p3), [#allocation3], %s1502_s23  ;;  %s216_s28 = scalar_lea.vmem (!%p207_p3), [#allocation2], %s1190_s25 }
  0x34   : > { %1345 = dma.done.wait (%p1788_p6), %s213_s26, 512  }
  0x35   : > { %1347 = vsyncadd (%p1788_p6), %s213_s26, 4294966784  ;;  %v1512_v0 = vld [vmem:[%s216_s28 + $0x10] sm:$0xff]  ;;  %v1514_v1 = vld [vmem:[%s216_s28] sm:$0xff]  ;;  %v267_v4 = vlaneseq  ;;  %v1371_v10 = vmov 0   ;;  %vm364_vm0 = vcmask 130112   ;;  %vm371_vm1 = vcmask 195712  }
  0x36   : > { %251 = vadd.xlane.f32.xlu1 %v1512_v0  ;;  %247 = vadd.xlane.f32.xlu0 %v1514_v1  ;;  %v1518_v2 = vld [vmem:[%s216_s28 + $0x18] sm:$0xff]  ;;  %v1520_v3 = vld [vmem:[%s216_s28 + $0x8] sm:$0xff]  ;;  %v259_v7 = vld [vmem:[%s1776_s1] sm:$0x3]  ;;  %vm378_vm2 = vcmask 261312   ;;  %vm399_vm3 = vcmask 1041409  }
  0x37   : > { %v1525_v5 = vshrl.u32 %v267_v4, 7  ;;  %1257 = vset.pattern.permute.xlu1 %v1371_v10  ;;  %1256 = vset.pattern.permute.xlu0 %v1371_v10  ;;  %v1192_v12 = vld [vmem:[%s1777_s2] ss:$0 sm:$0xff]  ;;  %v263_v40 = vld [vmem:[%s1778_s3 + $0x10] sm:$0xff]  ;;  %v262_v47 = vld [vmem:[%s1778_s3 + $0x8] sm:$0xff]  ;;  %vm402_vm4 = vcmask 254976  }
  0x38   : > { %v261_v34 = vld [vmem:[%s1778_s3] sm:$0xff]  ;;  %v264_v58 = vld [vmem:[%s1778_s3 + $0x18] sm:$0xff]  ;;  %vm966_vm5 = vcmask 1042434   ;;  %vm968_vm6 = vcmask 1043459   ;;  %vm970_vm7 = vcmask 1044484   ;;  %vm972_vm8 = vcmask 1045509  }
  0x39   : > { %v1528_v6 = vsub.s32 0, %v1525_v5  ;;  %v1535_v9 = vsub.s32 1, %v1525_v5  ;;  %v437_v32 = vsub.s32 2, %v1525_v5  ;;  %v444_v38 = vsub.s32 3, %v1525_v5  ;;  %s242_s29 = scalar_lea.vmem [#allocation5], %s1190_s25  ;;  %s1204_s14 = sshll.u32 %s1426_s22, 9 }
  0x3a   : > { %253 = vadd.xlane.f32.xlu1 %v1518_v2  ;;  %249 = vadd.xlane.f32.xlu0 %v1520_v3  ;;  %v451_v43 = vsub.s32 4, %v1525_v5  ;;  %v458_v49 = vsub.s32 5, %v1525_v5  ;;  %v465_v54 = vsub.s32 6, %v1525_v5  ;;  %v472_v60 = vsub.s32 7, %v1525_v5  ;;  %s1110_s12 = sshll.u32 %s242_s29, 4  ;;  %s1731_s8 = scalar_lea.hbm %s1780_s5, %s1204_s14  ;;  %s1725_s12 = int_to_ptr.vmem [resolvable:$true] %s1110_s12 }
  0x3b   : > { %v270_v8 = vrot.slane %v259_v7, %v1528_v6  ;;  %v289_v11 = vrot.slane %v259_v7, %v1535_v9  ;;  %v438_v37 = vrot.slane %v261_v34, %v437_v32  ;;  %v557_v42 = vrot.slane %v263_v40, %v444_v38  ;;  %s1097_s25 = scalar_lea.sflag [#allocation4], %s1502_s23  ;;  %s1302_s22 = scalar_lea.vmem %s1725_s12, 512 }
  0x3c   : > { %v424_v44 = vrot.slane %v261_v34, %v1528_v6  ;;  %v452_v45 = vrot.slane %v261_v34, %v451_v43  ;;  %v431_v46 = vrot.slane %v261_v34, %v1535_v9  ;;  %v564_v48 = vrot.slane %v263_v40, %v451_v43  ;;  %p1303_p11 = scmp.ne.s32.totalorder %s1725_s12, %s1302_s22  ;;  %p1789_p12 = scmp.ne.s32.totalorder %s1785_s30, 0 }
  0x3d   : > { %v480_v50 = vrot.slane %v262_v47, %v1528_v6  ;;  %v459_v51 = vrot.slane %v261_v34, %v458_v49  ;;  %v487_v52 = vrot.slane %v262_v47, %v1535_v9  ;;  %v571_v53 = vrot.slane %v263_v40, %v458_v49  ;;  %s1372_s7 = smov [#allocation5]  }
  0x3e   : > { %v536_v55 = vrot.slane %v263_v40, %v1528_v6  ;;  %v466_v56 = vrot.slane %v261_v34, %v465_v54  ;;  %v543_v57 = vrot.slane %v263_v40, %v1535_v9  ;;  %v578_v59 = vrot.slane %v263_v40, %v465_v54  ;;  %p1304_p13 = pnand %p1303_p11, %p1789_p12  ;;  %s1306_s9 = sshll.u32 %s1372_s7, 4  ;;  %s1307_s9 = int_to_ptr.vmem [resolvable:$false] %s1306_s9 }
  0x3f   : > { %v592_v61 = vrot.slane %v264_v58, %v1528_v6  ;;  %v473_v62 = vrot.slane %v261_v34, %v472_v60  ;;  %v599_v63 = vrot.slane %v264_v58, %v1535_v9  ;;  %v585_v7 = vrot.slane %v263_v40, %v472_v60  ;;  %s1308_s10 = scalar_lea.vmem %s1307_s9, 1024  ;;  %p1309_p5 = scmp.lt.s32.totalorder %s1725_s12, %s1307_s9 }
  0x40   : > { %v550_v10 = vrot.slane %v263_v40, %v437_v32  ;;  %v613_v6 = vrot.slane %v264_v58, %v444_v38  ;;  %v515_v9 = vrot.slane %v262_v47, %v458_v49  ;;  %vm974_vm9 = vcmask 1046534   ;;  %p1305_p4 = pneg %p1304_p13  ;;  %p1310_p7 = scmp.lt.s32.totalorder %s1308_s10, %s1302_s22 }
  0x41   : > { %vm976_vm10 = vcmask 1047559   ;;  %vm1003_vm11 = vcmask 15360  }
  0x42   : > { %p1311_p8 = por %p1310_p7, %p1309_p5 }
  0x44   : > { %p1312_p10 = pnand %p1311_p8, %p1305_p4 }
  0x4b   : > { %276 = vbcast.lane.b32.xlu1 %v270_v8, 264 }
  0x4f   : > { %291 = vbcast.lane.b32.xlu1 %v289_v11, 256 }
  0x50   : > { %272 = vbcast.lane.b32.xlu0 %v270_v8, 256 }
  0x53   : > { %295 = vbcast.lane.b32.xlu1 %v289_v11, 264 }
  0x54   : > { %280 = vbcast.lane.b32.xlu0 %v270_v8, 272 }
  0x57   : > { %299 = vbcast.lane.b32.xlu1 %v289_v11, 272 }
  0x58   : > { %284 = vbcast.lane.b32.xlu0 %v270_v8, 280  ;;  %v494_v8 = vrot.slane %v262_v47, %v437_v32 }
  0x5b   : > { %303 = vbcast.lane.b32.xlu1 %v289_v11, 280  ;;  %v606_v11 = vrot.slane %v264_v58, %v437_v32 }
  0x5c   : > { %412 = vbcast.lane.b32.xlu0 %v1192_v12, 256  ;;  %v445_v12 = vrot.slane %v261_v34, %v444_v38 }
  0xbf   : > { %v252_v13 = vpop.xlane.xlu1 %251  ;;  %v248_v14 = vpop.xlane.xlu0 %247 }
  0xc0   : > { %v255_v18 = vmul.f32 0.0078125, %v248_v14  ;;  %v257_v26 = vmul.f32 0.0078125, %v252_v13  ;;  %v501_v13 = vrot.slane %v262_v47, %v444_v38  ;;  %v508_v14 = vrot.slane %v262_v47, %v451_v43 }
  0xc3   : > { %v254_v15 = vpop.xlane.xlu1 %253  ;;  %v250_v16 = vpop.xlane.xlu0 %249 }
  0xc4   : > { %v256_v17 = vmul.f32 0.0078125, %v250_v16  ;;  %v258_v31 = vmul.f32 0.0078125, %v254_v15  ;;  %v620_v15 = vrot.slane %v264_v58, %v451_v43  ;;  %v627_v16 = vrot.slane %v264_v58, %v458_v49 }
  0xc7   : > { %v277_v19 = vpop.permute.xlu1 %276  ;;  %v273_v20 = vpop.permute.xlu0 %272 }
  0xc8   : > { %v314_v21 = vmul.f32 %v277_v19, %v256_v17  ;;  %v313_v22 = vmul.f32 %v273_v20, %v255_v18  ;;  %v529_v19 = vrot.slane %v262_v47, %v472_v60  ;;  %v641_v20 = vrot.slane %v264_v58, %v472_v60 }
  0xca   : > { %333 = vperm.xlu1 %1257, %v314_v21   ;;  %330 = vperm.xlu0 %1256, %v313_v22  }
  0xcb   : > { %v292_v23 = vpop.permute.xlu1 %291  ;;  %v281_v24 = vpop.permute.xlu0 %280 }
  0xcc   : > { %v317_v25 = vmul.f32 %v292_v23, %v255_v18  ;;  %v315_v28 = vmul.f32 %v281_v24, %v257_v26  ;;  %v634_v18 = vrot.slane %v264_v58, %v465_v54  ;;  %v354_v23 = vand.u32 127, %v267_v4 }
  0xce   : > { %342 = vperm.xlu1 %1257, %v317_v25  }
  0xcf   : > { %v296_v27 = vpop.permute.xlu1 %295  ;;  %v285_v30 = vpop.permute.xlu0 %284 }
  0xd0   : > { %v318_v29 = vmul.f32 %v296_v27, %v256_v17  ;;  %v316_v35 = vmul.f32 %v285_v30, %v258_v31  ;;  %v522_v17 = vrot.slane %v262_v47, %v465_v54  ;;  %v366_v27 = vadd.s32 4294967280, %v354_v23 }
  0xd2   : > { %345 = vperm.xlu0 %1256, %v318_v29   ;;  %336 = vperm.xlu1 %1257, %v315_v28   ;;  %v373_v28 = vadd.s32 4294967272, %v354_v23 }
  0xd3   : > { %v300_v33 = vpop.permute.xlu1 %299  ;;  %v413_v21 = vpop.permute.xlu0 %412 }
  0xd4   : > { %v319_v36 = vmul.f32 %v300_v33, %v257_v26  ;;  %v359_v26 = vadd.s32 4294967288, %v354_v23  ;;  %v369_v33 = vsub.s32 %v366_v27, %v1525_v5  ;;  %v376_v34 = vsub.s32 %v373_v28, %v1525_v5 }
  0xd6   : > { %348 = vperm.xlu0 %1256, %v319_v36   ;;  %339 = vperm.xlu1 %1257, %v316_v35   ;;  %v362_v32 = vsub.s32 %v359_v26, %v1525_v5 }
  0xd7   : > { %v304_v39 = vpop.permute.xlu1 %303 }
  0xd8   : > { %v320_v41 = vmul.f32 %v304_v39, %v258_v31  ;;  %v1569_v31 = vsub.s32 %v354_v23, %v1525_v5 }
  0xda   : > { %351 = vperm.xlu0 %1256, %v320_v41   ;;  %440 = vbcast.lane.b32.xlu1 %v438_v37, 256 }
  0xde   : > { %559 = vbcast.lane.b32.xlu1 %v557_v42, 256  ;;  %426 = vbcast.lane.b32.xlu0 %v424_v44, 256 }
  0xe2   : > { %454 = vbcast.lane.b32.xlu1 %v452_v45, 256  ;;  %433 = vbcast.lane.b32.xlu0 %v431_v46, 256 }
  0xe6   : > { %566 = vbcast.lane.b32.xlu1 %v564_v48, 256  ;;  %482 = vbcast.lane.b32.xlu0 %v480_v50, 256 }
  0xea   : > { %461 = vbcast.lane.b32.xlu1 %v459_v51, 256  ;;  %489 = vbcast.lane.b32.xlu0 %v487_v52, 256 }
  0xee   : > { %573 = vbcast.lane.b32.xlu1 %v571_v53, 256  ;;  %538 = vbcast.lane.b32.xlu0 %v536_v55, 256 }
  0xf2   : > { %468 = vbcast.lane.b32.xlu1 %v466_v56, 256  ;;  %545 = vbcast.lane.b32.xlu0 %v543_v57, 256 }
  0xf6   : > { %580 = vbcast.lane.b32.xlu1 %v578_v59, 256  ;;  %594 = vbcast.lane.b32.xlu0 %v592_v61, 256 }
  0xfa   : > { %475 = vbcast.lane.b32.xlu1 %v473_v62, 256  ;;  %601 = vbcast.lane.b32.xlu0 %v599_v63, 256 }
  0xfe   : > { %587 = vbcast.lane.b32.xlu1 %v585_v7, 256  ;;  %496 = vbcast.lane.b32.xlu0 %v494_v8, 256 }
 0x102   : > { %552 = vbcast.lane.b32.xlu0 %v550_v10, 256 }
 0x106   : > { %608 = vbcast.lane.b32.xlu0 %v606_v11, 256 }
 0x10a   : > { %447 = vbcast.lane.b32.xlu0 %v445_v12, 256 }
 0x10e   : > { %503 = vbcast.lane.b32.xlu0 %v501_v13, 256 }
 0x112   : > { %615 = vbcast.lane.b32.xlu0 %v613_v6, 256 }
 0x116   : > { %510 = vbcast.lane.b32.xlu0 %v508_v14, 256 }
 0x11a   : > { %622 = vbcast.lane.b32.xlu0 %v620_v15, 256 }
 0x11e   : > { %517 = vbcast.lane.b32.xlu0 %v515_v9, 256 }
 0x122   : > { %629 = vbcast.lane.b32.xlu0 %v627_v16, 256 }
 0x126   : > { %524 = vbcast.lane.b32.xlu0 %v522_v17, 256 }
 0x12a   : > { %636 = vbcast.lane.b32.xlu0 %v634_v18, 256 }
 0x12e   : > { %531 = vbcast.lane.b32.xlu0 %v529_v19, 256 }
 0x132   : > { %643 = vbcast.lane.b32.xlu0 %v641_v20, 256 }
 0x145   : > { %v334_v22 = vpop.permute.xlu1 %333  ;;  %v331_v24 = vpop.permute.xlu0 %330 }
 0x146   : > { %v363_v37 = vrot.slane %v334_v22, %v362_v32  ;;  %v358_v4 = vrot.slane %v331_v24, %v1569_v31 }
 0x148   : > { %v365_v44 = vsel %vm364_vm0, %v363_v37, %v358_v4 }
 0x149   : > { %v343_v25 = vpop.permute.xlu1 %342 }
 0x14a   : > { %v383_v41 = vrot.slane %v343_v25, %v1569_v31 }
 0x14d   : > { %v337_v29 = vpop.permute.xlu1 %336  ;;  %v346_v30 = vpop.permute.xlu0 %345 }
 0x14e   : > { %v387_v38 = vrot.slane %v346_v30, %v362_v32  ;;  %v370_v39 = vrot.slane %v337_v29, %v369_v33 }
 0x150   : > { %v388_v45 = vsel %vm364_vm0, %v387_v38, %v383_v41  ;;  %v372_v5 = vsel %vm371_vm1, %v370_v39, %v365_v44 }
 0x151   : > { %v340_v35 = vpop.permute.xlu1 %339  ;;  %v349_v36 = vpop.permute.xlu0 %348 }
 0x152   : > { %v392_v40 = vrot.slane %v349_v36, %v369_v33  ;;  %v377_v42 = vrot.slane %v340_v35, %v376_v34 }
 0x154   : > { %v393_v47 = vsel %vm371_vm1, %v392_v40, %v388_v45  ;;  %v379_v48 = vsel %vm378_vm2, %v377_v42, %v372_v5 }
 0x155   : > { %v352_v43 = vpop.permute.xlu0 %351  ;;  %v441_v53 = vpop.permute.xlu1 %440 }
 0x156   : > { %v397_v46 = vrot.slane %v352_v43, %v376_v34 }
 0x158   : > { %v398_v49 = vsel %vm378_vm2, %v397_v46, %v393_v47 }
 0x159   : > { %v400_v50 = vsel %vm399_vm3, %v398_v49, %v379_v48  ;;  %v427_v52 = vpop.permute.xlu0 %426  ;;  %v560_v55 = vpop.permute.xlu1 %559 }
 0x15a   : > { %v403_v51 = vsel %vm402_vm4, %v400_v50, 0.0 }
 0x15b   : > { %404 = vadd.xlane.f32.xlu1 %v403_v51 }
 0x15d   : > { %v434_v54 = vpop.permute.xlu0 %433  ;;  %v455_v57 = vpop.permute.xlu1 %454 }
 0x161   : > { %v483_v56 = vpop.permute.xlu0 %482  ;;  %v567_v59 = vpop.permute.xlu1 %566 }
 0x165   : > { %v490_v58 = vpop.permute.xlu0 %489  ;;  %v1577_v61 = vpop.permute.xlu1 %461 }
 0x169   : > { %v539_v60 = vpop.permute.xlu0 %538  ;;  %v1579_v63 = vpop.permute.xlu1 %573 }
 0x16d   : > { %v546_v62 = vpop.permute.xlu0 %545  ;;  %v1581_v8 = vpop.permute.xlu1 %468 }
 0x171   : > { %v595_v7 = vpop.permute.xlu0 %594  ;;  %v1583_v11 = vpop.permute.xlu1 %580 }
 0x175   : > { %v602_v10 = vpop.permute.xlu0 %601  ;;  %v1585_v13 = vpop.permute.xlu1 %475 }
 0x179   : > { %v497_v12 = vpop.permute.xlu0 %496  ;;  %v1587_v14 = vpop.permute.xlu1 %587 }
 0x17d   : > { %v553_v6 = vpop.permute.xlu0 %552 }
 0x181   : > { %v609_v15 = vpop.permute.xlu0 %608 }
 0x185   : > { %v448_v17 = vpop.permute.xlu0 %447 }
 0x189   : > { %v504_v22 = vpop.permute.xlu0 %503 }
 0x18d   : > { %v616_v26 = vpop.permute.xlu0 %615 }
 0x191   : > { %v511_v29 = vpop.permute.xlu0 %510 }
 0x195   : > { %v623_v35 = vpop.permute.xlu0 %622 }
 0x199   : > { %v518_v4 = vpop.permute.xlu0 %517 }
 0x19d   : > { %v630_v42 = vpop.permute.xlu0 %629 }
 0x1a1   : > { %v525_v45 = vpop.permute.xlu0 %524 }
 0x1a5   : > { %v637_v49 = vpop.permute.xlu0 %636 }
 0x1e4   : > { %v405_v9 = vpop.xlane.xlu1 %404 }
 0x1e5   : > { %v415_v16 = vadd.f32 %v413_v21, %v405_v9 }
 0x1e7   : > { %v1589_v18 = vmax.f32 %v415_v16, 0.0 }
 0x1e9   : > { %v677_v19 = vmul.f32 %v427_v52, %v1589_v18  ;;  %v678_v20 = vmul.f32 %v434_v54, %v1589_v18  ;;  %v685_v23 = vmul.f32 %v483_v56, %v1589_v18  ;;  %v686_v24 = vmul.f32 %v490_v58, %v1589_v18 }
 0x1ea   : > { %v693_v25 = vmul.f32 %v539_v60, %v1589_v18  ;;  %v694_v21 = vmul.f32 %v546_v62, %v1589_v18  ;;  %v701_v27 = vmul.f32 %v595_v7, %v1589_v18  ;;  %v702_v28 = vmul.f32 %v602_v10, %v1589_v18  ;;  %v1632_v60 = vld [vmem:[%s1779_s4] ss:$0 sm:$0xff] }
 0x1eb   : > { %742 = vperm.xlu1 %1257, %v677_v19   ;;  %745 = vperm.xlu0 %1256, %v678_v20   ;;  %v679_v30 = vmul.f32 %v441_v53, %v1589_v18  ;;  %v687_v32 = vmul.f32 %v497_v12, %v1589_v18  ;;  %v695_v33 = vmul.f32 %v553_v6, %v1589_v18  ;;  %v532_v53 = vpop.permute.xlu0 %531 }
 0x1ec   : > { %v703_v34 = vmul.f32 %v609_v15, %v1589_v18  ;;  %v680_v36 = vmul.f32 %v448_v17, %v1589_v18  ;;  %v688_v37 = vmul.f32 %v504_v22, %v1589_v18  ;;  %v696_v38 = vmul.f32 %v560_v55, %v1589_v18 }
 0x1ed   : > { %v704_v39 = vmul.f32 %v616_v26, %v1589_v18  ;;  %v681_v40 = vmul.f32 %v455_v57, %v1589_v18  ;;  %v689_v41 = vmul.f32 %v511_v29, %v1589_v18  ;;  %v697_v43 = vmul.f32 %v567_v59, %v1589_v18 }
 0x1ee   : > { %v705_v44 = vmul.f32 %v623_v35, %v1589_v18  ;;  %v682_v46 = vmul.f32 %v1577_v61, %v1589_v18  ;;  %v690_v5 = vmul.f32 %v518_v4, %v1589_v18  ;;  %v698_v47 = vmul.f32 %v1579_v63, %v1589_v18 }
 0x1ef   : > { %766 = vperm.xlu1 %1257, %v685_v23   ;;  %769 = vperm.xlu0 %1256, %v686_v24   ;;  %v706_v48 = vmul.f32 %v630_v42, %v1589_v18  ;;  %v683_v50 = vmul.f32 %v1581_v8, %v1589_v18  ;;  %v691_v51 = vmul.f32 %v525_v45, %v1589_v18  ;;  %v644_v57 = vpop.permute.xlu0 %643 }
 0x1f0   : > { %v699_v52 = vmul.f32 %v1583_v11, %v1589_v18  ;;  %v707_v54 = vmul.f32 %v637_v49, %v1589_v18  ;;  %v684_v55 = vmul.f32 %v1585_v13, %v1589_v18  ;;  %v692_v56 = vmul.f32 %v532_v53, %v1589_v18 }
 0x1f1   : > { %v700_v58 = vmul.f32 %v1587_v14, %v1589_v18  ;;  %v708_v59 = vmul.f32 %v644_v57, %v1589_v18 }
 0x1f3   : > { %790 = vperm.xlu1 %1257, %v693_v25   ;;  %793 = vperm.xlu0 %1256, %v694_v21  }
 0x1f7   : > { %814 = vperm.xlu1 %1257, %v701_v27   ;;  %817 = vperm.xlu0 %1256, %v702_v28  }
 0x1fb   : > { %748 = vperm.xlu1 %1257, %v679_v30   ;;  %772 = vperm.xlu0 %1256, %v687_v32  }
 0x1ff   : > { %796 = vperm.xlu1 %1257, %v695_v33   ;;  %820 = vperm.xlu0 %1256, %v703_v34  }
 0x203   : > { %751 = vperm.xlu1 %1257, %v680_v36   ;;  %775 = vperm.xlu0 %1256, %v688_v37  }
 0x207   : > { %799 = vperm.xlu1 %1257, %v696_v38   ;;  %823 = vperm.xlu0 %1256, %v704_v39  }
 0x20b   : > { %754 = vperm.xlu1 %1257, %v681_v40   ;;  %778 = vperm.xlu0 %1256, %v689_v41  }
 0x20f   : > { %802 = vperm.xlu1 %1257, %v697_v43   ;;  %826 = vperm.xlu0 %1256, %v705_v44  }
 0x213   : > { %757 = vperm.xlu1 %1257, %v682_v46   ;;  %781 = vperm.xlu0 %1256, %v690_v5  }
 0x217   : > { %805 = vperm.xlu1 %1257, %v698_v47   ;;  %829 = vperm.xlu0 %1256, %v706_v48  }
 0x21b   : > { %760 = vperm.xlu1 %1257, %v683_v50   ;;  %784 = vperm.xlu0 %1256, %v691_v51  }
 0x21f   : > { %808 = vperm.xlu1 %1257, %v699_v52   ;;  %832 = vperm.xlu0 %1256, %v707_v54  }
 0x223   : > { %763 = vperm.xlu1 %1257, %v684_v55   ;;  %787 = vperm.xlu0 %1256, %v692_v56  }
 0x227   : > { %811 = vperm.xlu1 %1257, %v700_v58   ;;  %835 = vperm.xlu0 %1256, %v708_v59  }
 0x22b   : > { %1026 = vbcast.lane.b32.xlu1 %v1632_v60, 264  ;;  %1022 = vbcast.lane.b32.xlu0 %v1632_v60, 256 }
 0x266   : > { %v743_v61 = vpop.permute.xlu1 %742  ;;  %v746_v62 = vpop.permute.xlu0 %745 }
 0x267   : > { %v840_v27 = vrot.slane %v743_v61, %v1569_v31  ;;  %v844_v28 = vrot.slane %v746_v62, %v1569_v31 }
 0x269   : > { %v965_v42 = vsel %vm399_vm3, %v844_v28, %v840_v27 }
 0x26a   : > { %v767_v63 = vpop.permute.xlu1 %766  ;;  %v770_v7 = vpop.permute.xlu0 %769 }
 0x26b   : > { %v872_v29 = vrot.slane %v767_v63, %v1569_v31  ;;  %v876_v30 = vrot.slane %v770_v7, %v1569_v31 }
 0x26d   : > { %v978_v43 = vsel %vm399_vm3, %v876_v30, %v872_v29 }
 0x26e   : > { %v791_v8 = vpop.permute.xlu1 %790  ;;  %v794_v10 = vpop.permute.xlu0 %793 }
 0x26f   : > { %v904_v32 = vrot.slane %v791_v8, %v1569_v31  ;;  %v908_v33 = vrot.slane %v794_v10, %v1569_v31 }
 0x271   : > { %v985_v45 = vsel %vm399_vm3, %v908_v33, %v904_v32 }
 0x272   : > { %v815_v11 = vpop.permute.xlu1 %814  ;;  %v818_v12 = vpop.permute.xlu0 %817 }
 0x273   : > { %v936_v34 = vrot.slane %v815_v11, %v1569_v31  ;;  %v940_v35 = vrot.slane %v818_v12, %v1569_v31 }
 0x275   : > { %v992_v46 = vsel %vm399_vm3, %v940_v35, %v936_v34 }
 0x276   : > { %v749_v13 = vpop.permute.xlu1 %748  ;;  %v773_v6 = vpop.permute.xlu0 %772 }
 0x277   : > { %v848_v37 = vrot.slane %v749_v13, %v1569_v31  ;;  %v880_v4 = vrot.slane %v773_v6, %v1569_v31 }
 0x279   : > { %v967_v49 = vsel %vm966_vm5, %v848_v37, %v965_v42  ;;  %v979_v50 = vsel %vm966_vm5, %v880_v4, %v978_v43 }
 0x27a   : > { %v797_v14 = vpop.permute.xlu1 %796  ;;  %v821_v15 = vpop.permute.xlu0 %820 }
 0x27b   : > { %v912_v39 = vrot.slane %v797_v14, %v1569_v31  ;;  %v944_v40 = vrot.slane %v821_v15, %v1569_v31 }
 0x27d   : > { %v986_v54 = vsel %vm966_vm5, %v912_v39, %v985_v45  ;;  %v993_v55 = vsel %vm966_vm5, %v944_v40, %v992_v46 }
 0x27e   : > { %v752_v9 = vpop.permute.xlu1 %751  ;;  %v776_v16 = vpop.permute.xlu0 %775 }
 0x27f   : > { %v852_v41 = vrot.slane %v752_v9, %v1569_v31  ;;  %v884_v44 = vrot.slane %v776_v16, %v1569_v31 }
 0x281   : > { %v969_v56 = vsel %vm968_vm6, %v852_v41, %v967_v49  ;;  %v980_v58 = vsel %vm968_vm6, %v884_v44, %v979_v50 }
 0x282   : > { %v1636_v17 = vpop.permute.xlu1 %799  ;;  %v1638_v18 = vpop.permute.xlu0 %823 }
 0x283   : > { %v916_v59 = vrot.slane %v1636_v17, %v1569_v31  ;;  %v948_v61 = vrot.slane %v1638_v18, %v1569_v31 }
 0x286   : > { %v755_v19 = vpop.permute.xlu1 %754  ;;  %v779_v20 = vpop.permute.xlu0 %778 }
 0x287   : > { %v856_v5 = vrot.slane %v755_v19, %v1569_v31  ;;  %v888_v47 = vrot.slane %v779_v20, %v1569_v31  ;;  %v987_v19 = vsel %vm968_vm6, %v916_v59, %v986_v54 }
 0x289   : > { %v971_v63 = vsel %vm970_vm7, %v856_v5, %v969_v56  ;;  %v981_v7 = vsel %vm970_vm7, %v888_v47, %v980_v58 }
 0x28a   : > { %v1640_v22 = vpop.permute.xlu1 %802  ;;  %v1642_v23 = vpop.permute.xlu0 %826 }
 0x28b   : > { %v920_v8 = vrot.slane %v1640_v22, %v1569_v31  ;;  %v952_v10 = vrot.slane %v1642_v23, %v1569_v31 }
 0x28e   : > { %v758_v24 = vpop.permute.xlu1 %757  ;;  %v782_v25 = vpop.permute.xlu0 %781 }
 0x28f   : > { %v860_v51 = vrot.slane %v758_v24, %v1569_v31  ;;  %v892_v52 = vrot.slane %v782_v25, %v1569_v31  ;;  %v994_v24 = vsel %vm968_vm6, %v948_v61, %v993_v55  ;;  %v988_v25 = vsel %vm970_vm7, %v920_v8, %v987_v19 }
 0x290   : > { %v995_v28 = vsel %vm970_vm7, %v952_v10, %v994_v24 }
 0x291   : > { %v973_v12 = vsel %vm972_vm8, %v860_v51, %v971_v63  ;;  %v982_v13 = vsel %vm972_vm8, %v892_v52, %v981_v7 }
 0x292   : > { %v1644_v21 = vpop.permute.xlu1 %805  ;;  %v1646_v26 = vpop.permute.xlu0 %829 }
 0x293   : > { %v924_v6 = vrot.slane %v1644_v21, %v1569_v31  ;;  %v956_v9 = vrot.slane %v1646_v26, %v1569_v31 }
 0x295   : > { %v989_v29 = vsel %vm972_vm8, %v924_v6, %v988_v25  ;;  %v996_v34 = vsel %vm972_vm8, %v956_v9, %v995_v28 }
 0x296   : > { %v761_v36 = vpop.permute.xlu1 %760  ;;  %v785_v38 = vpop.permute.xlu0 %784 }
 0x297   : > { %v864_v57 = vrot.slane %v761_v36, %v1569_v31  ;;  %v896_v62 = vrot.slane %v785_v38, %v1569_v31 }
 0x299   : > { %v975_v18 = vsel %vm974_vm9, %v864_v57, %v973_v12  ;;  %v983_v23 = vsel %vm974_vm9, %v896_v62, %v982_v13 }
 0x29a   : > { %v809_v48 = vpop.permute.xlu1 %808  ;;  %v833_v53 = vpop.permute.xlu0 %832 }
 0x29b   : > { %v928_v16 = vrot.slane %v809_v48, %v1569_v31  ;;  %v960_v20 = vrot.slane %v833_v53, %v1569_v31 }
 0x29d   : > { %v990_v36 = vsel %vm974_vm9, %v928_v16, %v989_v29  ;;  %v997_v4 = vsel %vm974_vm9, %v960_v20, %v996_v34 }
 0x29e   : > { %v764_v11 = vpop.permute.xlu1 %763  ;;  %v788_v15 = vpop.permute.xlu0 %787 }
 0x29f   : > { %v868_v14 = vrot.slane %v764_v11, %v1569_v31  ;;  %v900_v17 = vrot.slane %v788_v15, %v1569_v31 }
 0x2a1   : > { %v977_v22 = vsel %vm976_vm10, %v868_v14, %v975_v18  ;;  %v984_v27 = vsel %vm976_vm10, %v900_v17, %v983_v23 }
 0x2a2   : > { %v812_v21 = vpop.permute.xlu1 %811  ;;  %v1004_v26 = vsel %vm1003_vm11, %v977_v22, 0.0  ;;  %v836_v32 = vpop.permute.xlu0 %835  ;;  %v1007_v33 = vsel %vm1003_vm11, %v984_v27, 0.0 }
 0x2a3   : > { %v932_v30 = vrot.slane %v812_v21, %v1569_v31  ;;  %1005 = vadd.xlane.f32.xlu1 %v1004_v26  ;;  %v964_v35 = vrot.slane %v836_v32, %v1569_v31  ;;  %1008 = vadd.xlane.f32.xlu0 %v1007_v33 }
 0x2a5   : > { %v991_v37 = vsel %vm976_vm10, %v932_v30, %v990_v36  ;;  %v998_v39 = vsel %vm976_vm10, %v964_v35, %v997_v4 }
 0x2a6   : > { %v1010_v38 = vsel %vm1003_vm11, %v991_v37, 0.0  ;;  %v1013_v40 = vsel %vm1003_vm11, %v998_v39, 0.0  ;;  %v1027_v31 = vpop.permute.xlu1 %1026  ;;  %v1023_v41 = vpop.permute.xlu0 %1022 }
 0x2a7   : > { %1011 = vadd.xlane.f32.xlu0 %v1010_v38  ;;  %1014 = vadd.xlane.f32.xlu1 %v1013_v40 }
 0x2b8   : > { %1030 = vbcast.lane.b32.xlu1 %v1632_v60, 272 }
 0x2bd   : > { %1034 = vbcast.lane.b32.xlu0 %v1632_v60, 280 }
 0x32c   : > { %v1006_v42 = vpop.xlane.xlu1 %1005  ;;  %v1009_v44 = vpop.xlane.xlu0 %1008 }
 0x32d   : > { %v1040_v43 = vadd.f32 %v1023_v41, %v1006_v42  ;;  %v1041_v45 = vadd.f32 %v1027_v31, %v1009_v44 }
 0x32f   : > { %v1194_v46 = vmul.f32 -1.442695, %v1040_v43  ;;  %v1195_v5 = vmul.f32 -1.442695, %v1041_v45 }
 0x330   : > { %v1015_v47 = vpop.xlane.xlu1 %1014  ;;  %v1012_v48 = vpop.xlane.xlu0 %1011 }
 0x331   : > { %1258 = vpow2.f32 %v1194_v46 }
 0x332   : > { %1260 = vpow2.f32 %v1195_v5 }
 0x334   : > { %v1031_v49 = vpop.permute.xlu1 %1030  ;;  %v1035_v50 = vpop.permute.xlu0 %1034 }
 0x335   : > { %v1042_v51 = vadd.f32 %v1031_v49, %v1012_v48  ;;  %v1043_v52 = vadd.f32 %v1035_v50, %v1015_v47 }
 0x337   : > { %v1196_v53 = vmul.f32 -1.442695, %v1042_v51  ;;  %v1197_v54 = vmul.f32 -1.442695, %v1043_v52 }
 0x339   : > { %1262 = vpow2.f32 %v1196_v53 }
 0x33a   : > { %1264 = vpow2.f32 %v1197_v54 }
 0x33e   : > { %v1259_v60 = vpop.eup %1258 }
 0x33f   : > { %v1261_v55 = vpop.eup %1260  ;;  %v1056_v56 = vadd.f32 1.0, %v1259_v60 }
 0x340   : > { %v1057_v57 = vadd.f32 1.0, %v1261_v55 }
 0x341   : > { %1266 = vrcp.f32 %v1056_v56 }
 0x342   : > { %1268 = vrcp.f32 %v1057_v57 }
 0x346   : > { %v1263_v58 = vpop.eup %1262 }
 0x347   : > { %v1265_v59 = vpop.eup %1264  ;;  %v1058_v61 = vadd.f32 1.0, %v1263_v58 }
 0x348   : > { %v1059_v62 = vadd.f32 1.0, %v1265_v59 }
 0x349   : > { %1270 = vrcp.f32 %v1058_v61 }
 0x34a   : > { %1272 = vrcp.f32 %v1059_v62 }
 0x34e   : > { %v1267_v63 = vpop.eup %1266 }
 0x34f   : > { %v1269_v7 = vpop.eup %1268  ;;  %1070 = vperm.xlu1 %1257, %v1267_v63  }
 0x350   : > { %1075 = vperm.xlu0 %1256, %v1269_v7  }
 0x356   : > { %v1271_v8 = vpop.eup %1270 }
 0x357   : > { %v1273_v10 = vpop.eup %1272  ;;  %1080 = vperm.xlu1 %1257, %v1271_v8  }
 0x358   : > { %1085 = vperm.xlu0 %1256, %v1273_v10  }
 0x3ca   : > { %v1071_v11 = vpop.permute.xlu1 %1070 }
 0x3cb   : > { %v1088_v12 = vmul.f32 %v1071_v11, %v1514_v1  ;;  %v1076_v13 = vpop.permute.xlu0 %1075 }
 0x3cc   : > { %v1089_v6 = vmul.f32 %v1076_v13, %v1520_v3 }
 0x3cd   : > { %1092 = vst [vmem:[%s242_s29] sm:$0xff] %v1088_v12 }
 0x3ce   : > { %1093 = vst [vmem:[%s242_s29 + $0x8] sm:$0xff] %v1089_v6 }
 0x3d2   : > { %v1081_v14 = vpop.permute.xlu1 %1080 }
 0x3d3   : > { %v1090_v15 = vmul.f32 %v1081_v14, %v1512_v0  ;;  %v1086_v1 = vpop.permute.xlu0 %1085 }
 0x3d4   : > { %v1091_v3 = vmul.f32 %v1086_v1, %v1518_v2 }
 0x3d5   : > { %1094 = vst [vmem:[%s242_s29 + $0x10] sm:$0xff] %v1090_v15 }
 0x3d6   : > { %1095 = vst [vmem:[%s242_s29 + $0x18] sm:$0xff] %v1091_v3 }
 0x3d7   : > { %1315 = shalt.err (!%p1312_p10)
}
 0x3d8   : > { %s1316_s11 = scalar_lea.hbm %s1731_s8, 512  ;;  %s1320_s26 = scalar_lea.hbm %s1780_s5, 1024 }
 0x3d9   : > { %p1317_p0 = scmp.ne.s32.totalorder %s1731_s8, %s1316_s11  ;;  %p1321_p1 = scmp.lt.s32.totalorder %s1731_s8, %s1780_s5 }
 0x3da   : > { %p1322_p3 = scmp.lt.s32.totalorder %s1320_s26, %s1316_s11 }
 0x3db   : > { %p1318_p2 = pnand %p1317_p0, %p1789_p12 }
 0x3dc   : > { %p1323_p6 = por %p1322_p3, %p1321_p1 }
 0x3dd   : > { %p1319_p9 = pneg %p1318_p2 }
 0x3df   : > { %p1324_p11 = pnand %p1323_p6, %p1319_p9 }
 0x3e1   : > { %1327 = shalt.err (!%p1324_p11)
}
 0x3e2   : > { %s1373_s14 = smov 128   ;;  %s1374_s15 = smov 8  }
 0x3e3   : > { %1207 = dma.vmem_to_hbm [thread:$0]  (%p1789_p12), %s1725_s12, 512, %s1731_s8, %s1097_s25, %s1373_s14, %s1373_s14, %s1374_s15  }
 0x3e4 PF: > { %s1125_s16 = sand.u32 1, %s1354_s18   ;;  %p1790_p13 = scmp.ne.s32.totalorder %s1786_s6, 0 }
 0x3e5   : > { %p1791_p4 = scmp.ge.s32.totalorder %s1366_s21, 2  ;;  %s1126_s22 = scalar_lea.sflag [#allocation4], %s1125_s16 }
 0x3e7   : > { %p1214_p5 = pnand %p1791_p4, %p1790_p13 }
 0x3e9   : > { %p1215_p7 = pneg %p1214_p5 }
 0x3eb   : > { %1349 = dma.done.wait (%p1215_p7), %s1126_s22, 512  }
 0x3ec   : > { %1351 = vsyncadd (%p1215_p7), %s1126_s22, 4294966784  ;;  %p18_p8 = scmp.ge.s32.totalorder %s1430_s24, 4   ;;  %s1792_s18 = smov %s1358_s19 }
 0x3ed   : > { %s1793_s19 = smov %s1362_s20  ;;  %s1794_s20 = smov %s1442_s27 }
 0x3ee   : > { %s1795_s21 = smov %s1430_s24  ;;  %20 = sbr.rel (!%p18_p8) target bundleno = 5 (0x5), region = 85 }
 0x3f3   :  { %1131 = vsyncpa [#allocation3], 1 }
 0x3f4   :  { %1133 = vsyncpa [#allocation3 + $0x1], 1 }
 0x3f5   :  { %1134 = vsyncpa [#allocation4], 1 }
 0x3f6   :  { %1136 = vsyncpa [#allocation4 + $0x1], 1 }

</bundles_post_ra>
